<compile_context>
chip_gen: v7x
topology: tpu7x:2x2x1
jax: 0.10.0
libtpu: 0.0.40
codegen_flags: <defaults>
</compile_context>

<pallas_src>
import jax
import jax.numpy as jnp
from jax.experimental import pallas as pl
from jax.experimental.pallas import tpu as pltpu


def _round_up(a, b):
    return (a + b - 1) // b * b


def _conv_stats_kernel(cols_ref, w_ref, conv_ref, sum_ref, sq_ref):
    """Pass 1: conv tile + BN partial statistics.

    cols_ref: (1, K, MT)   w_ref: (1, Cout, K)
    conv_ref: (1, Cout, MT) sum_ref/sq_ref: (1, 1, Cout, 1)
    """
    acc = jnp.dot(
        w_ref[0], cols_ref[0],
        preferred_element_type=jnp.float32,
        precision=jax.lax.Precision.HIGHEST,
    )                                                   # (Cout, MT), lane-dense in MT
    conv_ref[0] = acc.astype(conv_ref.dtype)
    sum_ref[0, 0] = jnp.sum(acc, axis=1, keepdims=True)          # (Cout, 1)
    sq_ref[0, 0] = jnp.sum(acc * acc, axis=1, keepdims=True)     # (Cout, 1)


def _bn_apply_kernel(conv_ref, scale_ref, shift_ref, out_ref):
    """Pass 2: per-channel affine normalize.  conv/out: (1, Cout, MT), scale/shift: (Cout, 1)."""
    out_ref[0] = (conv_ref[0] * scale_ref[...] + shift_ref[...]).astype(out_ref.dtype)


def cnn_up_block_forward(x_nchw, wt, bias, gamma, beta, *, stride, pad, eps=1e-4):
    """Forward of CNNUpBlock.

    x_nchw : (N, Cin, H, W)       -- PyTorch NCHW input
    wt     : (Cin, Cout, k, k)    -- PyTorch ConvTranspose2d weight layout
    bias   : (Cout,)              -- ConvTranspose2d bias (mathematically cancelled by
                                     training-mode BatchNorm -> not used in the compute)
    gamma, beta : (Cout,)         -- BatchNorm2d affine params
    Returns (N, Cout, OH, OW) with OH = (H-1)*stride - 2*pad + k.
    """
    del bias  # per-channel constant before training-mode BN cancels exactly
    n, cin, h, w_in = x_nchw.shape
    cin_w, cout, kh, kw = wt.shape
    assert cin == cin_w and kh == kw
    k = kh
    s = int(stride)
    assert s >= 1 and 0 <= pad <= k - 1, "unsupported stride/pad for this kernel"
    oh = (h - 1) * s - 2 * pad + k
    ow = (w_in - 1) * s - 2 * pad + k

    # ---- sub-pixel decomposition bookkeeping (all static Python ints) ----
    kt = -(-k // s)          # padded taps per spatial dim per phase
    oh2 = -(-oh // s)        # per-phase output rows (padded up to full phase grid)
    ow2 = -(-ow // s)
    m_ph = n * oh2 * ow2     # per-phase output positions (incl. padded rows/cols)
    kdim = kt * kt * cin

    m_tile = min(2048, _round_up(m_ph, 128))
    m_pad = _round_up(m_ph, m_tile)
    n_m = m_pad // m_tile
    n_ph = s * s

    # ---- glue: NCHW -> NHWC, zero-pad the ORIGINAL input so every shifted view is in range
    x = jnp.transpose(x_nchw, (0, 2, 3, 1))                      # (N, H, W, Cin)
    offs = [(p_ + pad) // s - ti for p_ in range(s) for ti in range(kt)]
    pad_top = max(0, -min(offs))
    pad_bot = max(0, (oh2 - 1) + max(offs) - (h - 1))
    pad_lft = max(0, -min(offs))
    pad_rgt = max(0, (ow2 - 1) + max(offs) - (w_in - 1))
    xz = jnp.pad(x, ((0, 0), (pad_top, pad_bot), (pad_lft, pad_rgt), (0, 0)))

    # ---- build per-phase im2col slab (K, M) with spatial M on the lane axis ----
    cols_phases, w_phases = [], []
    for py in range(s):
        ry, qy = (py + pad) % s, (py + pad) // s
        for px in range(s):
            rx, qx = (px + pad) % s, (px + pad) // s
            taps, wtaps = [], []
            for ti in range(kt):
                for tj in range(kt):
                    y0 = pad_top + qy - ti
                    x0 = pad_lft + qx - tj
                    v = xz[:, y0:y0 + oh2, x0:x0 + ow2, :]       # (N, oh2, ow2, Cin)
                    taps.append(v.reshape(m_ph, cin).T)          # (Cin, m_ph)
                    ki = ry + s * ti
                    kj = rx + s * tj
                    if ki < k and kj < k:
                        wtaps.append(wt[:, :, ki, kj].T)         # (Cout, Cin)
                    else:
                        wtaps.append(jnp.zeros((cout, cin), wt.dtype))
            cols_p = jnp.concatenate(taps, axis=0)               # (K, m_ph)
            w_p = jnp.concatenate(wtaps, axis=1)                 # (Cout, K)
            # mask out phase positions that fall outside the true OH x OW output
            # (their conv value becomes exactly 0 -> contributes nothing to BN stats)
            vy = (py + s * jnp.arange(oh2)) < oh
            vx = (px + s * jnp.arange(ow2)) < ow
            mask = jnp.broadcast_to((vy[:, None] & vx[None, :])[None], (n, oh2, ow2))
            cols_p = cols_p * mask.reshape(1, m_ph).astype(cols_p.dtype)
            cols_p = jnp.pad(cols_p, ((0, 0), (0, m_pad - m_ph)))
            cols_phases.append(cols_p)
            w_phases.append(w_p)
    cols = jnp.stack(cols_phases, axis=0)                        # (s*s, K, m_pad)
    w2 = jnp.stack(w_phases, axis=0).astype(jnp.float32)         # (s*s, Cout, K)

    cparams = pltpu.CompilerParams(
        dimension_semantics=("parallel", "parallel"),
        vmem_limit_bytes=32 * 1024 * 1024,
    )

    # ---- pass 1: conv + per-tile BN partials ----
    conv_out, sums, sqs = pl.pallas_call(
        _conv_stats_kernel,
        out_shape=(
            jax.ShapeDtypeStruct((n_ph, cout, m_pad), jnp.float32),
            jax.ShapeDtypeStruct((n_ph, n_m, cout, 1), jnp.float32),
            jax.ShapeDtypeStruct((n_ph, n_m, cout, 1), jnp.float32),
        ),
        grid=(n_ph, n_m),
        in_specs=[
            pl.BlockSpec((1, kdim, m_tile), lambda f, j: (f, 0, j)),
            pl.BlockSpec((1, cout, kdim), lambda f, j: (f, 0, 0)),
        ],
        out_specs=(
            pl.BlockSpec((1, cout, m_tile), lambda f, j: (f, 0, j)),
            pl.BlockSpec((1, 1, cout, 1), lambda f, j: (f, j, 0, 0)),
            pl.BlockSpec((1, 1, cout, 1), lambda f, j: (f, j, 0, 0)),
        ),
        compiler_params=cparams,
    )(cols, w2)

    # ---- tiny wrapper math: fold batch stats into per-channel scale/shift ----
    count = jnp.float32(n * oh * ow)                 # true element count (masked cols -> 0)
    total = jnp.sum(sums, axis=(0, 1, 3))            # (Cout,)
    total_sq = jnp.sum(sqs, axis=(0, 1, 3))          # (Cout,)
    mean = total / count
    var = total_sq / count - mean * mean             # biased variance (training-mode BN)
    inv = jax.lax.rsqrt(var + jnp.float32(eps))
    scale = (gamma * inv).reshape(cout, 1).astype(jnp.float32)
    shift = (beta - mean * gamma * inv).reshape(cout, 1).astype(jnp.float32)

    # ---- pass 2: normalize ----
    out2 = pl.pallas_call(
        _bn_apply_kernel,
        out_shape=jax.ShapeDtypeStruct((n_ph, cout, m_pad), x.dtype),
        grid=(n_ph, n_m),
        in_specs=[
            pl.BlockSpec((1, cout, m_tile), lambda f, j: (f, 0, j)),
            pl.BlockSpec((cout, 1), lambda f, j: (0, 0)),
            pl.BlockSpec((cout, 1), lambda f, j: (0, 0)),
        ],
        out_specs=pl.BlockSpec((1, cout, m_tile), lambda f, j: (f, 0, j)),
        compiler_params=cparams,
    )(conv_out, scale, shift)

    # ---- glue: interleave phases back into (N, Cout, OH, OW) ----
    y = out2[:, :, :m_ph].reshape(s, s, cout, n, oh2, ow2)
    y = jnp.transpose(y, (3, 2, 4, 0, 5, 1)).reshape(n, cout, oh2 * s, ow2 * s)
    return y[:, :, :oh, :ow]


def _reference(x, wt, b, gamma, beta, stride, pad, eps=1e-4):
    """Pure-JAX reference: ConvTranspose2d + training-mode BatchNorm2d (NCHW)."""
    k = wt.shape[2]
    w_oihw = jnp.flip(wt, axis=(2, 3)).transpose(1, 0, 2, 3)  # (Cout, Cin, k, k)
    y = jax.lax.conv_general_dilated(
        x, w_oihw, window_strides=(1, 1),
        padding=[(k - 1 - pad, k - 1 - pad)] * 2,
        lhs_dilation=(stride, stride),
        dimension_numbers=("NCHW", "OIHW", "NCHW"),
        precision=jax.lax.Precision.HIGHEST,
    )
    y = y + b[None, :, None, None]
    mean = y.mean(axis=(0, 2, 3), keepdims=True)
    var = ((y - mean) ** 2).mean(axis=(0, 2, 3), keepdims=True)
    return ((y - mean) * jax.lax.rsqrt(var + eps) * gamma[None, :, None, None]
            + beta[None, :, None, None])


if __name__ == "__main__":
    key = jax.random.PRNGKey(0)
    kx, kw, kb, kg, kbe = jax.random.split(key, 5)

    # CNNUpBlock(in_size=4, out_size=8, k_size=3, stride=2, pad=1, bias=True)
    in_size, out_size, k_size, stride, pad = 4, 8, 3, 2, 1
    x = jax.random.normal(kx, (2, in_size, 16, 16), jnp.float32)
    wt = 0.1 * jax.random.normal(kw, (in_size, out_size, k_size, k_size), jnp.float32)
    b = 0.1 * jax.random.normal(kb, (out_size,), jnp.float32)
    gamma = 1.0 + 0.1 * jax.random.normal(kg, (out_size,), jnp.float32)
    beta = 0.1 * jax.random.normal(kbe, (out_size,), jnp.float32)

    out = cnn_up_block_forward(x, wt, b, gamma, beta, stride=stride, pad=pad)
    out = jax.block_until_ready(out)

    oh = (16 - 1) * stride - 2 * pad + k_size
    assert out.shape == (2, out_size, oh, oh), out.shape

    ref = _reference(x, wt, b, gamma, beta, stride, pad)
    max_err = float(jnp.max(jnp.abs(out - ref)))
    assert jnp.allclose(out, ref, atol=1e-3, rtol=1e-3), f"max_err={max_err}"

    print("KERNEL_OK")
</pallas_src>

<mosaic_0001>
module attributes {stable_mosaic.version = 11 : i64} {
  func.func @_conv_stats_kernel(%arg0: i32, %arg1: i32, %arg2: memref<1x16x512xf32, #tpu.memory_space<vmem>>, %arg3: memref<1x8x16xf32, #tpu.memory_space<vmem>>, %arg4: memref<1x8x512xf32, #tpu.memory_space<vmem>>, %arg5: memref<1x1x8x1xf32, #tpu.memory_space<vmem>>, %arg6: memref<1x1x8x1xf32, #tpu.memory_space<vmem>>) attributes {dimension_semantics = [#tpu.dimension_semantics<parallel>, #tpu.dimension_semantics<parallel>], iteration_bounds = array<i64: 4, 1>, scalar_prefetch = 0 : i64, scratch_operands = 0 : i64, tpu.core_type = #tpu.core_type<tc>, window_params = [{transform_indices = @transform_0, window_bounds = array<i64: 1, 16, 512>}, {transform_indices = @transform_1, window_bounds = array<i64: 1, 8, 16>}, {transform_indices = @transform_2, window_bounds = array<i64: 1, 8, 512>}, {transform_indices = @transform_3, window_bounds = array<i64: 1, 1, 8, 1>}, {transform_indices = @transform_4, window_bounds = array<i64: 1, 1, 8, 1>}]} {
    %c0 = arith.constant 0 : index
    %c0_0 = arith.constant 0 : index
    %c0_1 = arith.constant 0 : index
    %0 = vector.load %arg3[%c0, %c0_0, %c0_1] : memref<1x8x16xf32, #tpu.memory_space<vmem>>, vector<1x8x16xf32>
    %1 = vector.shape_cast %0 : vector<1x8x16xf32> to vector<8x16xf32>
    %c0_2 = arith.constant 0 : index
    %c0_3 = arith.constant 0 : index
    %c0_4 = arith.constant 0 : index
    %2 = vector.load %arg2[%c0_2, %c0_3, %c0_4] : memref<1x16x512xf32, #tpu.memory_space<vmem>>, vector<1x16x512xf32>
    %3 = vector.shape_cast %2 : vector<1x16x512xf32> to vector<16x512xf32>
    %cst = arith.constant dense<0.000000e+00> : vector<8x512xf32>
    %4 = tpu.matmul %1, %3, %cst {dimension_numbers = #tpu.dot_dimension_numbers<[1], [0], [0], [1], [0, 0, 1, 1], [], []>, precision = #tpu.contract_precision<fp32>} : vector<8x16xf32>, vector<16x512xf32>, vector<8x512xf32> -> vector<8x512xf32>
    %c0_5 = arith.constant 0 : index
    %c0_6 = arith.constant 0 : index
    %c0_7 = arith.constant 0 : index
    %5 = vector.load %arg4[%c0_5, %c0_6, %c0_7] : memref<1x8x512xf32, #tpu.memory_space<vmem>>, vector<1x8x512xf32>
    %6 = vector.shape_cast %5 : vector<1x8x512xf32> to vector<8x512xf32>
    %7 = vector.shape_cast %4 : vector<8x512xf32> to vector<1x8x512xf32>
    tpu.vector_store %arg4[%c0_5, %c0_6, %c0_7], %7 {strides = array<i32>} : memref<1x8x512xf32, #tpu.memory_space<vmem>>, vector<1x8x512xf32>,
    %cst_8 = arith.constant dense<0.000000e+00> : vector<8xf32>
    %8 = vector.multi_reduction <add>, %4, %cst_8 [1] : vector<8x512xf32> to vector<8xf32>
    %9 = vector.shape_cast %8 : vector<8xf32> to vector<8x1xf32>
    %c0_9 = arith.constant 0 : index
    %c0_10 = arith.constant 0 : index
    %c0_11 = arith.constant 0 : index
    %c0_12 = arith.constant 0 : index
    %10 = vector.load %arg5[%c0_9, %c0_10, %c0_11, %c0_12] : memref<1x1x8x1xf32, #tpu.memory_space<vmem>>, vector<1x1x8x1xf32>
    %11 = vector.shape_cast %10 : vector<1x1x8x1xf32> to vector<8x1xf32>
    %12 = vector.shape_cast %9 : vector<8x1xf32> to vector<1x1x8x1xf32>
    tpu.vector_store %arg5[%c0_9, %c0_10, %c0_11, %c0_12], %12 {strides = array<i32>} : memref<1x1x8x1xf32, #tpu.memory_space<vmem>>, vector<1x1x8x1xf32>,
    %13 = arith.mulf %4, %4 : vector<8x512xf32>
    %cst_13 = arith.constant dense<0.000000e+00> : vector<8xf32>
    %14 = vector.multi_reduction <add>, %13, %cst_13 [1] : vector<8x512xf32> to vector<8xf32>
    %15 = vector.shape_cast %14 : vector<8xf32> to vector<8x1xf32>
    %c0_14 = arith.constant 0 : index
    %c0_15 = arith.constant 0 : index
    %c0_16 = arith.constant 0 : index
    %c0_17 = arith.constant 0 : index
    %16 = vector.load %arg6[%c0_14, %c0_15, %c0_16, %c0_17] : memref<1x1x8x1xf32, #tpu.memory_space<vmem>>, vector<1x1x8x1xf32>
    %17 = vector.shape_cast %16 : vector<1x1x8x1xf32> to vector<8x1xf32>
    %18 = vector.shape_cast %15 : vector<8x1xf32> to vector<1x1x8x1xf32>
    tpu.vector_store %arg6[%c0_14, %c0_15, %c0_16, %c0_17], %18 {strides = array<i32>} : memref<1x1x8x1xf32, #tpu.memory_space<vmem>>, vector<1x1x8x1xf32>,
    return
  }
  func.func @transform_0(%arg0: i32, %arg1: i32) -> (i32, i32, i32) {
    %c0_i32 = arith.constant 0 : i32
    %c0_i32_0 = arith.constant 0 : i32
    return %arg0, %c0_i32, %arg1 : i32, i32, i32
  }
  func.func @transform_1(%arg0: i32, %arg1: i32) -> (i32, i32, i32) {
    %c0_i32 = arith.constant 0 : i32
    %c0_i32_0 = arith.constant 0 : i32
    %c0_i32_1 = arith.constant 0 : i32
    return %arg0, %c0_i32, %c0_i32_0 : i32, i32, i32
  }
  func.func @transform_2(%arg0: i32, %arg1: i32) -> (i32, i32, i32) {
    %c0_i32 = arith.constant 0 : i32
    %c0_i32_0 = arith.constant 0 : i32
    return %arg0, %c0_i32, %arg1 : i32, i32, i32
  }
  func.func @transform_3(%arg0: i32, %arg1: i32) -> (i32, i32, i32, i32) {
    %c0_i32 = arith.constant 0 : i32
    %c0_i32_0 = arith.constant 0 : i32
    %c0_i32_1 = arith.constant 0 : i32
    return %arg0, %arg1, %c0_i32, %c0_i32_0 : i32, i32, i32, i32
  }
  func.func @transform_4(%arg0: i32, %arg1: i32) -> (i32, i32, i32, i32) {
    %c0_i32 = arith.constant 0 : i32
    %c0_i32_0 = arith.constant 0 : i32
    %c0_i32_1 = arith.constant 0 : i32
    return %arg0, %arg1, %c0_i32, %c0_i32_0 : i32, i32, i32, i32
  }
}

</mosaic_0001>

<bundles_post_ra>
// kernel: tpu_custom_call.1
= control target key start
LH: loop header
LB: loop body
LE: loop exit
PB: predicated region body
PF: predicated region fallthrough
CT: control target
= control target key end

     0   :  { %10 = vsyncpa [#allocation3], 0  ;;  %s2173_s0 = inlined_call_operand.hbm [shape: f32[4,16,512], index: 0, kind: input, shape index: {}]   ;;  %s2174_s1 = inlined_call_operand.hbm [shape: f32[4,8,16], index: 1, kind: input, shape index: {}]   ;;  %s2175_s2 = inlined_call_operand.hbm [shape: f32[4,8,512], index: 2, kind: output, shape index: {0}]   ;;  %s2176_s3 = inlined_call_operand.vmem [shape: f32[4,1,8,1], index: 3, kind: output, shape index: {1}]   ;;  %s2177_s4 = inlined_call_operand.vmem [shape: f32[4,1,8,1], index: 4, kind: output, shape index: {2}]  }
   0x1   :  { %12 = vsyncpa [#allocation3 + $0x1], 0 }
   0x2   :  { %13 = vsyncpa [#allocation6], 0 }
   0x3   :  { %15 = vsyncpa [#allocation6 + $0x1], 0 }
   0x4   :  { %16 = vsyncpa [#allocation4], 0 }
   0x5   :  { %18 = vsyncpa [#allocation4 + $0x1], 0  ;;  %s1871_s15 = smov 0   ;;  %s1873_s16 = smov 0  }
   0x6   :  { %s1875_s17 = smov 0   ;;  %s1877_s18 = smov 0  }
   0x7   :  { %s1879_s19 = smov 0   ;;  %s1881_s20 = smov 0  }
   0x8 LB: > { %s1532_s21 = sadd.s32 4294967295, %s1838_s20   ;;  %s1533_s22 = sadd.s32 4294967294, %s1838_s20   ;;  %s1838_s20 = sphi %s1881_s20, %s24_s20   ;;  %s1834_s19 = sphi %s1879_s19, %s2195_s19   ;;  %s1830_s18 = sphi %s1877_s18, %s2194_s18   ;;  %s1826_s17 = sphi %s1875_s17, %s2193_s17   ;;  %s1822_s16 = sphi %s1873_s16, %s2192_s16   ;;  %s1818_s15 = sphi %s1871_s15, %s2191_s15  }
   0x9   : > { %s36_s23 = sadd.s32 1, %s1834_s19  ;;  %s45_s24 = sadd.s32 1, %s1826_s17 }
   0xa   : > { %p38_p0 = scmp.ge.s32.totalorder %s36_s23, 4  ;;  %p52_p1 = scmp.ne.s32.totalorder %s1826_s17, %s1822_s16 }
   0xb   : > { %p53_p2 = scmp.eq.s32.totalorder %s1838_s20, 0  ;;  %p58_p3 = scmp.ne.s32.totalorder %s1822_s16, %s1818_s15 }
   0xc   : > { %s2197_s23 = smov (%p38_p0, %s36_s23), 0  ;;  %p59_p5 = scmp.eq.s32.totalorder %s1532_s21, 0 }
   0xd   : > { %p1912_p4 = por %p53_p2, %p52_p1  ;;  %s40_s26 = ssub.s32 %s1834_s19, %s2197_s23 }
   0xe   : > { %p110_p6 = scmp.eq.s32.totalorder %s1532_s21, 3  ;;  %p43_p7 = scmp.eq.s32.totalorder %s40_s26, 0 }
   0xf   : > { %p1918_p8 = por %p59_p5, %p58_p3  ;;  %p116_p10 = scmp.eq.s32.totalorder %s1533_s22, 3 }
  0x10   : > { %p1922_p9 = por %p110_p6, %p52_p1  ;;  %p1639_p12 = scmp.lt.s32.totalorder %s1838_s20, 4 }
  0x11   : > { %s2181_s27 = scalar_select %p1918_p8, 1, 0 }
  0x12   : > { %s2182_s28 = scalar_select %p1922_p9, 1, 0 }
  0x13   : > { %s1927_s29 = scalar_select %p43_p7, %s1826_s17, %s45_s24  }
  0x14   : > { %p1929_p11 = por %p116_p10, %p58_p3  ;;  %s1935_s5 = sand.u32 1, %s1826_s17  }
  0x15   : > { %s1536_s6 = sshll.u32 %s1935_s5, 6  ;;  %s1552_s7 = sshll.u32 %s1834_s19, 10 }
  0x16   : > { %s2183_s30 = scalar_select %p1929_p11, 1, 0 }
  0x17   : > { %s1942_s10 = scalar_lea.hbm %s2173_s0, %s1552_s7  ;;  %s196_s11 = scalar_lea.vmem [#allocation2], %s1536_s6 }
  0x18   : > { %s205_s12 = sshll.u32 %s196_s11, 4  ;;  %p1948_p13 = pnand %p1639_p12, %p1912_p4  ;;  %s1944_s12 = int_to_ptr.vmem [resolvable:$true] %s205_s12 }
  0x19   : > { %s193_s14 = scalar_lea.sflag [#allocation3], %s1935_s5  ;;  %s1692_s21 = scalar_lea.hbm %s1942_s10, 1024 }
  0x1a   : > { %p1693_p1 = scmp.ne.s32.totalorder %s1942_s10, %s1692_s21  ;;  %p1694_p2 = pneg %p1948_p13 }
  0x1b   : > { %s1697_s25 = scalar_lea.hbm %s2173_s0, 4096  ;;  %p1698_p4 = scmp.lt.u32.totalorder %s1942_s10, %s2173_s0 }
  0x1c   : > { %p1695_p3 = pnand %p1694_p2, %p1693_p1  ;;  %p1699_p6 = scmp.lt.u32.totalorder %s1697_s25, %s1692_s21 }
  0x1d   : > { %p1701_p10 = scmp.lt.u32.totalorder %s1692_s21, %s1942_s10 }
  0x1e   : > { %p1696_p5 = pneg %p1695_p3  ;;  %p1700_p7 = por %p1699_p6, %p1698_p4 }
  0x20   : > { %p1702_p12 = por %p1701_p10, %p1700_p7 }
  0x22   : > { %p1703_p0 = pnand %p1702_p12, %p1696_p5 }
  0x24   : > { %1706 = shalt.err (!%p1703_p0)
}
  0x25   : > { %s1707_s7 = scalar_lea.vmem %s1944_s12, 1024  ;;  %s1840_s8 = smov [#allocation2]  }
  0x26   : > { %p1708_p1 = scmp.ne.s32.totalorder %s1944_s12, %s1707_s7  ;;  %s1712_s9 = sshll.u32 %s1840_s8, 4  ;;  %s1713_s9 = int_to_ptr.vmem [resolvable:$false] %s1712_s9 }
  0x27   : > { %s1714_s11 = scalar_lea.vmem %s1713_s9, 2048  ;;  %p1715_p9 = scmp.lt.s32.totalorder %s1944_s12, %s1713_s9 }
  0x28   : > { %p1710_p3 = pnand %p1708_p1, %p1694_p2  ;;  %p1716_p4 = scmp.lt.s32.totalorder %s1714_s11, %s1707_s7 }
  0x2a   : > { %p1711_p11 = pneg %p1710_p3  ;;  %p1717_p6 = por %p1716_p4, %p1715_p9 }
  0x2c   : > { %p1718_p7 = pnand %p1717_p6, %p1711_p11 }
  0x2e   : > { %1721 = shalt.err (!%p1718_p7)
}
  0x2f   : > { %s1841_s21 = smov 512   ;;  %s1842_s22 = smov 32  }
  0x30   : > { %1631 = dma.hbm_to_vmem [thread:$0]  (!%p1948_p13), %s1942_s10, 1024, %s1944_s12, %s193_s14, %s1841_s21, %s1841_s21, %s1842_s22  }
  0x31   : > { %p231_p0 = scmp.lt.s32.totalorder %s1838_s20, 5  ;;  %s1539_s24 = sshll.u32 %s1935_s5, 3 }
  0x32   : > { %s1540_s25 = sshll.u32 %s1834_s19, 7  ;;  %p2185_p9 = scmp.ge.s32.totalorder %s1838_s20, 1 }
  0x33   : > { %s1993_s8 = scalar_lea.hbm %s2174_s1, %s1540_s25  ;;  %s219_s9 = scalar_lea.vmem [#allocation5], %s1539_s24 }
  0x34   : > { %p1986_p11 = pnand %p2185_p9, %p231_p0  ;;  %s226_s11 = sshll.u32 %s219_s9, 4  ;;  %s227_s11 = int_to_ptr.vmem [resolvable:$true] %s226_s11 }
  0x35   : > { %s216_s10 = scalar_lea.sflag [#allocation6], %s1935_s5  ;;  %s1722_s12 = scalar_lea.hbm %s1993_s8, 128 }
  0x36   : > { %s2186_s26 = scalar_select %p1986_p11, 1, 0 }
  0x37   : > { %p1723_p5 = scmp.ne.s32.totalorder %s1993_s8, %s1722_s12  ;;  %s1727_s22 = scalar_lea.hbm %s2174_s1, 512 }
  0x38   : > { %p1728_p1 = scmp.lt.u32.totalorder %s1993_s8, %s2174_s1  ;;  %p1729_p3 = scmp.lt.u32.totalorder %s1727_s22, %s1722_s12 }
  0x39   : > { %p1725_p10 = pnand %p1723_p5, %p1694_p2  ;;  %p1731_p6 = scmp.lt.u32.totalorder %s1722_s12, %s1993_s8 }
  0x3a   : > { %p1730_p4 = por %p1729_p3, %p1728_p1 }
  0x3b   : > { %p1726_p12 = pneg %p1725_p10 }
  0x3c   : > { %p1732_p7 = por %p1731_p6, %p1730_p4 }
  0x3e   : > { %p1733_p0 = pnand %p1732_p7, %p1726_p12 }
  0x40   : > { %1736 = shalt.err (!%p1733_p0)
}
  0x41   : > { %s1737_s5 = scalar_lea.vmem %s227_s11, 128  ;;  %s1843_s24 = smov [#allocation5]  }
  0x42   : > { %p1738_p9 = scmp.ne.s32.totalorder %s227_s11, %s1737_s5  ;;  %s1742_s7 = sshll.u32 %s1843_s24, 4  ;;  %s1743_s7 = int_to_ptr.vmem [resolvable:$false] %s1742_s7 }
  0x43   : > { %s1744_s9 = scalar_lea.vmem %s1743_s7, 256  ;;  %p1745_p8 = scmp.lt.s32.totalorder %s227_s11, %s1743_s7 }
  0x44   : > { %p1740_p5 = pnand %p1738_p9, %p1694_p2  ;;  %p1746_p11 = scmp.lt.s32.totalorder %s1744_s9, %s1737_s5 }
  0x46   : > { %p1741_p10 = pneg %p1740_p5  ;;  %p1747_p1 = por %p1746_p11, %p1745_p8 }
  0x48   : > { %p1748_p3 = pnand %p1747_p1, %p1741_p10 }
  0x4a   : > { %1751 = shalt.err (!%p1748_p3)
}
  0x4b   : > { %1634 = dma.hbm_to_vmem [thread:$0]  (!%p1948_p13), %s1993_s8, 128, %s227_s11, %s216_s10  }
  0x4c   : > { %p2187_p12 = scmp.ne.s32.totalorder %s2186_s26, 0 }
  0x4d   : > { %s2018_s12 = sand.u32 (!%p2187_p12), 1, %s1822_s16   ;;  %p2188_p2 = scmp.ne.s32.totalorder (!%p2187_p12), %s2181_s27, 0 }
  0x4e   : > { %235 = sbr.rel (%p2187_p12) target bundleno = 512 (0x200), region = 28  ;;  %s1542_s14 = sshll.u32 (!%p2187_p12), %s2018_s12, 6 }
  0x4f   : > { %s238_s21 = scalar_lea.sflag (!%p2187_p12), [#allocation3], %s2018_s12  ;;  %s241_s22 = scalar_lea.vmem (!%p2187_p12), [#allocation2], %s1542_s14 }
  0x55   : > { %1805 = dma.done.wait (%p2188_p2), %s238_s21, 1024  }
  0x56   : > { %1807 = vsyncadd (%p2188_p2), %s238_s21, 4294966272  ;;  %s1543_s13 = sshll.u32 %s2018_s12, 3  ;;  %s247_s26 = scalar_lea.sflag [#allocation6], %s2018_s12 }
  0x57   : > { %s250_s8 = scalar_lea.vmem [#allocation5], %s1543_s13 }
  0x58   : > { %1809 = dma.done.wait (%p2188_p2), %s247_s26, 128  }
  0x59   : > { %1811 = vsyncadd (%p2188_p2), %s247_s26, 4294967168  ;;  %v1844_v0 = vmov 0.0   ;;  %v312_v1 = vld [vmem:[%s241_s22 + $0x8] sm:$0xff]  ;;  %v314_v3 = vld [vmem:[%s241_s22 + $0x18] sm:$0xff]  ;;  %vm319_vm0 = vcmask 130048   ;;  %s1544_s27 = sshll.u32 %s2018_s12, 5 }
  0x5a   : > { %391 = vmatprep.mubr.f32.mxu0 %v1844_v0  ;;  %882 = vmatprep.mubr.f32.mxu1 %v1844_v0  ;;  %v316_v2 = vld [vmem:[%s241_s22 + $0x28] sm:$0xff]  ;;  %v323_v4 = vand.u32 4294901760, %v312_v1  ;;  %v318_v6 = vld [vmem:[%s241_s22 + $0x38] sm:$0xff]  ;;  %v814_v7 = vand.u32 4294901760, %v314_v3  ;;  %v311_v8 = vld [vmem:[%s241_s22] sm:$0xff]  ;;  %s275_s11 = scalar_lea.vmem [#allocation7], %s1544_s27 }
  0x5b   : > { %v327_v5 = vand.u32 4294901760, %v316_v2  ;;  %v315_v9 = vld [vmem:[%s241_s22 + $0x20] sm:$0xff]  ;;  %v818_v10 = vand.u32 4294901760, %v318_v6  ;;  %v325_v11 = vand.u32 4294901760, %v311_v8  ;;  %v313_v13 = vld [vmem:[%s241_s22 + $0x10] sm:$0xff]  ;;  %s1553_s10 = sshll.u32 %s1830_s18, 9 }
  0x5c   : > { %v329_v12 = vand.u32 4294901760, %v315_v9  ;;  %v317_v14 = vld [vmem:[%s241_s22 + $0x30] sm:$0xff]  ;;  %v310_v15 = vld [vmem:[%s250_s8] sm:$0xff]  ;;  %v2036_v17 = vsub.f32 %v312_v1, %v323_v4  ;;  %v2040_v19 = vsub.f32 %v314_v3, %v814_v7  ;;  %v816_v25 = vand.u32 4294901760, %v313_v13  ;;  %s1357_s25 = sshll.u32 %s275_s11, 4  ;;  %s2123_s24 = scalar_lea.hbm %s2175_s2, %s1553_s10  ;;  %s1358_s25 = int_to_ptr.vmem [resolvable:$true] %s1357_s25 }
  0x5d   : > { %v2034_v16 = vpack.c.bf16 %v327_v5, %v323_v4  ;;  %v2038_v18 = vsub.f32 %v316_v2, %v327_v5  ;;  %v2042_v20 = vpack.c.bf16 %v818_v10, %v814_v7  ;;  %v2044_v21 = vsub.f32 %v318_v6, %v818_v10  ;;  %s1327_s7 = scalar_lea.sflag [#allocation4], %s2018_s12  ;;  %s1752_s9 = scalar_lea.vmem %s1358_s25, 512 }
  0x5e   : > { %v2046_v22 = vpack.c.bf16 %v329_v12, %v325_v11  ;;  %v2048_v23 = vsub.f32 %v311_v8, %v325_v11  ;;  %v2051_v24 = vsub.f32 %v315_v9, %v329_v12  ;;  %v820_v26 = vand.u32 4294901760, %v317_v14  ;;  %p1753_p8 = scmp.ne.s32.totalorder %s1358_s25, %s1752_s9  ;;  %p2189_p13 = scmp.ne.s32.totalorder %s2182_s28, 0 }
  0x5f   : > { %1555 = vmatprep.subr.bf16.mxu0 %v2034_v16  ;;  %v321_v27 = vsel %vm319_vm0, %v310_v15, 0  ;;  %1579 = vmatprep.subr.bf16.mxu1 %v2042_v20  ;;  %v405_v29 = vand.u32 4294901760, %v2036_v17  ;;  %v417_v30 = vand.u32 4294901760, %v2038_v18  ;;  %v2063_v33 = vsub.f32 %v313_v13, %v816_v25  ;;  %s1845_s14 = smov [#allocation7]  }
  0x60   : > { %1557 = vmatpush1.bf16.msra.mxu0 %v2046_v22  ;;  %v2056_v28 = vand.u32 4294901760, %v321_v27  ;;  %v411_v31 = vand.u32 4294901760, %v2048_v23  ;;  %v2061_v32 = vpack.c.bf16 %v820_v26, %v816_v25  ;;  %v2065_v34 = vsub.f32 %v317_v14, %v820_v26  ;;  %p1754_p11 = pnand %p1753_p8, %p2189_p13  ;;  %s1756_s21 = sshll.u32 %s1845_s14, 4  ;;  %s1757_s21 = int_to_ptr.vmem [resolvable:$false] %s1756_s21 }
  0x61   : > { %v423_v35 = vand.u32 4294901760, %v2051_v24  ;;  %v406_v37 = vsub.f32 %v2036_v17, %v405_v29  ;;  %v418_v38 = vsub.f32 %v2038_v18, %v417_v30  ;;  %v896_v41 = vand.u32 4294901760, %v2040_v19  ;;  %s1758_s22 = scalar_lea.vmem %s1757_s21, 1024  ;;  %p1759_p6 = scmp.lt.s32.totalorder %s1358_s25, %s1757_s21 }
  0x62   : > { %v393_v36 = vsub.f32 %v321_v27, %v2056_v28  ;;  %v412_v39 = vsub.f32 %v2048_v23, %v411_v31  ;;  %1581 = vmatpush1.bf16.msra.mxu1 %v2061_v32  ;;  %v908_v42 = vand.u32 4294901760, %v2044_v21  ;;  %v902_v43 = vand.u32 4294901760, %v2063_v33  ;;  %p1755_p4 = pneg %p1754_p11  ;;  %p1760_p7 = scmp.lt.s32.totalorder %s1758_s22, %s1752_s9 }
  0x63   : > { %v424_v40 = vsub.f32 %v2051_v24, %v423_v35  ;;  %v407_v45 = vand.u32 4294901760, %v406_v37  ;;  %v419_v46 = vand.u32 4294901760, %v418_v38  ;;  %v897_v49 = vsub.f32 %v2040_v19, %v896_v41 }
  0x64   : > { %v394_v44 = vand.u32 4294901760, %v393_v36  ;;  %v413_v47 = vand.u32 4294901760, %v412_v39  ;;  %v909_v50 = vsub.f32 %v2044_v21, %v908_v42  ;;  %v903_v51 = vsub.f32 %v2063_v33, %v902_v43  ;;  %p1761_p0 = por %p1760_p7, %p1759_p6 }
  0x65   : > { %v425_v48 = vand.u32 4294901760, %v424_v40  ;;  %v1558_v53 = vpack.c.bf16 %v419_v46, %v407_v45  ;;  %v914_v54 = vand.u32 4294901760, %v2065_v34  ;;  %v898_v56 = vand.u32 4294901760, %v897_v49 }
  0x66   : > { %v395_v52 = vsub.f32 %v393_v36, %v394_v44  ;;  %v910_v57 = vand.u32 4294901760, %v909_v50  ;;  %v904_v59 = vand.u32 4294901760, %v903_v51  ;;  %v1562_v62 = vpack.c.bf16 %v2038_v18, %v2036_v17  ;;  %p1762_p9 = pnand %p1761_p0, %p1755_p4 }
  0x67   : > { %v1560_v55 = vpack.c.bf16 %v425_v48, %v413_v47  ;;  %1559 = vmatprep.subr.bf16.mxu0 %v1558_v53  ;;  %v915_v60 = vsub.f32 %v2065_v34, %v914_v54  ;;  %v1586_v1 = vpack.c.bf16 %v2044_v21, %v2040_v19  ;;  %v1564_v3 = vpack.c.bf16 %v2051_v24, %v2048_v23 }
  0x68   : > { %v396_v58 = vand.u32 4294901760, %v395_v52  ;;  %v1582_v61 = vpack.c.bf16 %v910_v57, %v898_v56  ;;  %v1588_v4 = vpack.c.bf16 %v2065_v34, %v2063_v33  ;;  %v1570_v5 = vpack.c.bf16 %v417_v30, %v405_v29 }
  0x69   : > { %v916_v63 = vand.u32 4294901760, %v915_v60  ;;  %v1594_v6 = vpack.c.bf16 %v908_v42, %v896_v41  ;;  %v1572_v7 = vpack.c.bf16 %v423_v35, %v411_v31  ;;  %v1596_v8 = vpack.c.bf16 %v914_v54, %v902_v43 }
  0x6a   : > { %397 = vmatmul.mubr.f32.vlgmr.msra.gmra.mrb[0].mxu0 %v396_v58  ;;  %888 = vmatmul.mubr.f32.vlgmr.msra.gmra.mrb[0].mxu1 %v396_v58 }
  0x6b   : > { %1561 = vmatpush1.bf16.msra.mxu0 %v1560_v55  ;;  %1583 = vmatprep.subr.bf16.mxu1 %v1582_v61  ;;  %v1584_v2 = vpack.c.bf16 %v916_v63, %v904_v59 }
  0x6c   : > { %487 = vmatprep.mubr.f32.mxu0 %v1844_v0  ;;  %978 = vmatprep.mubr.f32.mxu1 %v1844_v0 }
  0x6d   : > { %1563 = vmatprep.subr.bf16.mxu0 %v1562_v62  ;;  %1585 = vmatpush1.bf16.msra.mxu1 %v1584_v2 }
  0x6e   : > { %1587 = vmatprep.subr.bf16.mxu1 %v1586_v1 }
  0x72   : > { %489 = vmatmul.mubr.f32.vlgmr.msra.gmra.mrb[0].mxu0 %v2056_v28  ;;  %980 = vmatmul.mubr.f32.vlgmr.msra.gmra.mrb[0].mxu1 %v2056_v28 }
  0x73   : > { %1565 = vmatpush1.bf16.msra.mxu0 %v1564_v3  ;;  %1589 = vmatpush1.bf16.msra.mxu1 %v1588_v4 }
  0x74   : > { %567 = vmatprep.mubr.f32.mxu0 %v1844_v0  ;;  %1058 = vmatprep.mubr.f32.mxu1 %v1844_v0 }
  0x75   : > { %1567 = vmatprep.subr.bf16.mxu0 %v2034_v16  ;;  %1591 = vmatprep.subr.bf16.mxu1 %v2042_v20 }
  0x7a   : > { %570 = vmatmul.mubr.f32.vlgmr.msra.gmra.mrb[0].mxu0 %v393_v36  ;;  %1061 = vmatmul.mubr.f32.vlgmr.msra.gmra.mrb[0].mxu1 %v393_v36 }
  0x7b   : > { %1569 = vmatpush1.bf16.msra.mxu0 %v2046_v22  ;;  %1593 = vmatpush1.bf16.msra.mxu1 %v2061_v32 }
  0x7c   : > { %644 = vmatprep.mubr.f32.mxu0 %v1844_v0  ;;  %1135 = vmatprep.mubr.f32.mxu1 %v1844_v0 }
  0x7d   : > { %1571 = vmatprep.subr.bf16.mxu0 %v1570_v5  ;;  %1595 = vmatprep.subr.bf16.mxu1 %v1594_v6 }
  0x82   : > { %648 = vmatmul.mubr.f32.vlgmr.msra.gmra.mrb[0].mxu0 %v394_v44  ;;  %1139 = vmatmul.mubr.f32.vlgmr.msra.gmra.mrb[0].mxu1 %v394_v44 }
  0x83   : > { %1573 = vmatpush1.bf16.msra.mxu0 %v1572_v7  ;;  %1597 = vmatpush1.bf16.msra.mxu1 %v1596_v8 }
  0x84   : > { %730 = vmatprep.mubr.f32.mxu0 %v1844_v0  ;;  %1221 = vmatprep.mubr.f32.mxu1 %v1844_v0 }
  0x85   : > { %1575 = vmatprep.subr.bf16.mxu0 %v2034_v16  ;;  %1599 = vmatprep.subr.bf16.mxu1 %v2042_v20 }
  0x8a   : > { %732 = vmatmul.mubr.f32.vlgmr.msra.gmra.mrb[0].mxu0 %v2056_v28  ;;  %1223 = vmatmul.mubr.f32.vlgmr.msra.gmra.mrb[0].mxu1 %v2056_v28 }
  0x8b   : > { %1577 = vmatpush1.bf16.msra.mxu0 %v2046_v22  ;;  %1601 = vmatpush1.bf16.msra.mxu1 %v2061_v32 }
  0x8c   : > { %806 = vmatprep.mubr.f32.mxu0 %v1844_v0  ;;  %1297 = vmatprep.mubr.f32.mxu1 %v1844_v0 }
  0x92   : > { %808 = vmatmul.mubr.f32.vlgmr.msra.gmra.mrb[0].mxu0 %v2056_v28  ;;  %1299 = vmatmul.mubr.f32.vlgmr.msra.gmra.mrb[0].mxu1 %v2056_v28 }
 0x165   : > { %v809_v9 = vpop.f32.mrb[0].mxu0  ;;  %v1300_v10 = vpop.f32.mrb[0].mxu1 }
 0x166   : > { %1305 = vst [vmem:[%s275_s11] sm:$0xff] %v809_v9  ;;  %v1316_v11 = vmul.f32 %v809_v9, %v809_v9  ;;  %1307 = vst [vmem:[%s275_s11 + $0x10] sm:$0xff] %v1300_v10  ;;  %v811_v12 = vpop.f32.mrb[1].mxu0  ;;  %v1302_v13 = vpop.f32.mrb[1].mxu1  ;;  %v1318_v0 = vmul.f32 %v1300_v10, %v1300_v10 }
 0x167   : > { %1306 = vst [vmem:[%s275_s11 + $0x8] sm:$0xff] %v811_v12  ;;  %v1309_v14 = vadd.f32 %v811_v12, %v809_v9  ;;  %v1317_v15 = vmul.f32 %v811_v12, %v811_v12  ;;  %1308 = vst [vmem:[%s275_s11 + $0x18] sm:$0xff] %v1302_v13  ;;  %v1319_v18 = vmul.f32 %v1302_v13, %v1302_v13 }
 0x169   : > { %v1320_v16 = vadd.f32 %v1317_v15, %v1316_v11  ;;  %v1310_v17 = vadd.f32 %v1309_v14, %v1300_v10 }
 0x16b   : > { %v1311_v19 = vadd.f32 %v1310_v17, %v1302_v13  ;;  %v1321_v20 = vadd.f32 %v1320_v16, %v1318_v0 }
 0x16d   : > { %1312 = vadd.xlane.f32.xlu0 %v1311_v19  ;;  %v1322_v21 = vadd.f32 %v1321_v20, %v1319_v18 }
 0x171   : > { %1323 = vadd.xlane.f32.xlu0 %v1322_v21 }
 0x172   : > { %1765 = shalt.err (!%p1762_p9)
}
 0x173   : > { %s1766_s12 = scalar_lea.hbm %s2123_s24, 512  ;;  %s1770_s8 = scalar_lea.hbm %s2175_s2, 2048 }
 0x174   : > { %p1767_p5 = scmp.ne.s32.totalorder %s2123_s24, %s1766_s12  ;;  %p1771_p3 = scmp.lt.u32.totalorder %s2123_s24, %s2175_s2 }
 0x175   : > { %p1772_p12 = scmp.lt.u32.totalorder %s1770_s8, %s1766_s12  ;;  %p1774_p8 = scmp.lt.u32.totalorder %s1766_s12, %s2123_s24 }
 0x176   : > { %p1768_p10 = pnand %p1767_p5, %p2189_p13 }
 0x177   : > { %p1773_p2 = por %p1772_p12, %p1771_p3 }
 0x178   : > { %p1769_p1 = pneg %p1768_p10 }
 0x179   : > { %p1775_p11 = por %p1774_p8, %p1773_p2 }
 0x17b   : > { %p1776_p4 = pnand %p1775_p11, %p1769_p1 }
 0x17d   : > { %1779 = shalt.err (!%p1776_p4)
}
 0x17e   : > { %1626 = dma.vmem_to_hbm [thread:$0]  (%p2189_p13), %s1358_s25, 512, %s2123_s24, %s1327_s7   ;;  %vm1314_vm1 = vcmask 7168  }
 0x17f   : > { %p296_p6 = scmp.lt.s32.totalorder %s1830_s18, 3 }
 0x181   : > { %s2199_s18 = smov (!%p296_p6, %s1830_s18), 3 }
 0x182   : > { %s1545_s10 = sshll.u32 %s2199_s18, 3 }
 0x183   : > { %s302_s9 = scalar_lea.vmem %s2176_s3, %s1545_s10  ;;  %s309_s22 = scalar_lea.vmem %s2177_s4, %s1545_s10 }
 0x1fa   : > { %v1313_v22 = vpop.xlane.xlu0 %1312 }
 0x1fb   : > { %1315 = vst.msk [vmem:[%s302_s9] sm:$0xff] %vm1314_vm1, %v1313_v22 }
 0x1fe   : > { %v1324_v23 = vpop.xlane.xlu0 %1323 }
 0x1ff   : > { %1325 = vst.msk [vmem:[%s309_s22] sm:$0xff] %vm1314_vm1, %v1324_v23 }
 0x200 PF: > { %p1640_p13 = scmp.ge.s32.totalorder %s1838_s20, 2  ;;  %s1375_s28 = sand.u32 1, %s1818_s15  }
 0x201   : > { %p2190_p7 = scmp.ne.s32.totalorder %s2183_s30, 0  ;;  %s1376_s18 = scalar_lea.sflag [#allocation4], %s1375_s28 }
 0x203   : > { %p1636_p0 = pnand %p1640_p13, %p2190_p7 }
 0x205   : > { %1813 = dma.done.wait (!%p1636_p0), %s1376_s18, 512  }
 0x206   : > { %1815 = vsyncadd (!%p1636_p0), %s1376_s18, 4294966784  ;;  %s24_s20 = sadd.s32 1, %s1838_s20   ;;  %s2191_s15 = smov %s1822_s16 }
 0x207   : > { %p21_p9 = scmp.ge.s32.totalorder %s24_s20, 6   ;;  %s2192_s16 = smov %s1826_s17 }
 0x208   : > { %s2193_s17 = smov %s1927_s29  ;;  %s2194_s18 = smov %s1834_s19 }
 0x209   : > { %s2195_s19 = smov %s2197_s23  ;;  %23 = sbr.rel (!%p21_p9) target bundleno = 8 (0x8), region = 110 }
 0x210   :  { %1401 = vsyncpa [#allocation3], 1 }
 0x211   :  { %1403 = vsyncpa [#allocation3 + $0x1], 1 }
 0x212   :  { %1404 = vsyncpa [#allocation6], 1 }
 0x213   :  { %1406 = vsyncpa [#allocation6 + $0x1], 1 }
 0x214   :  { %1407 = vsyncpa [#allocation4], 1 }
 0x215   :  { %1409 = vsyncpa [#allocation4 + $0x1], 1 }

</bundles_post_ra>
